<compile_context>
chip_gen: v6e
topology: v6e:2x2x1
jax: 0.10.0
libtpu: 0.0.40
codegen_flags: <defaults>
</compile_context>

<pallas_src>
import math
from functools import partial

import jax
import jax.numpy as jnp
from jax.experimental import pallas as pl
from jax.experimental.pallas import tpu as pltpu


def _mha_kernel(x_ref, wq_ref, wk_ref, wv_ref, o_ref, *, num_heads, d_out,
                mxu_dtype):
    """One grid step = `block_b` batch elements, all heads fused.

    Block shapes:
      x_ref          : (block_b, S, d_in)
      wq/wk/wv_ref   : (H, d_in, d_out)            (resident across the grid)
      o_ref          : (block_b, H, S, d_out)      (head-concat done outside)
    """
    block_b, seq, d_in = x_ref.shape
    bh = block_b * num_heads

    xb = x_ref[...]
    wq = wq_ref[...]
    wk = wk_ref[...]
    wv = wv_ref[...]
    if mxu_dtype is not None:                       # optional bf16 MXU feed
        xb = xb.astype(mxu_dtype)
        wq = wq.astype(mxu_dtype)
        wk = wk.astype(mxu_dtype)
        wv = wv.astype(mxu_dtype)

    # Build leading-batch operands: replicate x over heads and the weights
    # over the batch block so every (batch, head) pair is one batch element of
    # a leading-batch batched matmul. Only leading-dim broadcasts/merges are
    # used -> no per-head lane slices, no concat, no second-minor transposes.
    xh = jnp.broadcast_to(xb[:, None], (block_b, num_heads, seq, d_in))
    xh = xh.reshape(bh, seq, d_in)
    wqh = jnp.broadcast_to(wq[None], (block_b, num_heads, d_in, d_out))
    wqh = wqh.reshape(bh, d_in, d_out)
    wkh = jnp.broadcast_to(wk[None], (block_b, num_heads, d_in, d_out))
    wkh = wkh.reshape(bh, d_in, d_out)
    wvh = jnp.broadcast_to(wv[None], (block_b, num_heads, d_in, d_out))
    wvh = wvh.reshape(bh, d_in, d_out)

    # Projections; 1/sqrt(d_out) is already folded into wq wrapper-side.
    # Native-dtype MXU operands, f32 accumulation.
    q = jnp.einsum('bsd,bde->bse', xh, wqh, preferred_element_type=jnp.float32)
    k = jnp.einsum('bsd,bde->bse', xh, wkh, preferred_element_type=jnp.float32)
    v = jnp.einsum('bsd,bde->bse', xh, wvh, preferred_element_type=jnp.float32)

    # q @ k^T with the transpose folded into the contraction.
    scores = jnp.einsum('bqd,bkd->bqk', q, k,
                        preferred_element_type=jnp.float32)   # (bh, S, S)

    row = jax.lax.broadcasted_iota(jnp.int32, (seq, seq), 0)
    col = jax.lax.broadcasted_iota(jnp.int32, (seq, seq), 1)
    causal = (col <= row)[None]                                # True = keep
    scores = jnp.where(causal, scores, jnp.float32(-1e30))

    # Numerically-stable softmax with deferred normalization (all f32).
    m = jnp.max(scores, axis=-1, keepdims=True)
    p = jnp.exp(scores - m)
    denom = jnp.sum(p, axis=-1, keepdims=True)                 # (bh, S, 1)

    pv_dtype = jnp.float32 if mxu_dtype is None else mxu_dtype
    o = jnp.einsum('bqk,bkd->bqd', p.astype(pv_dtype), v.astype(pv_dtype),
                   preferred_element_type=jnp.float32)         # (bh, S, d_out)
    o = o * pl.reciprocal(denom, approx=False)     # scale S*d_out, not S*S

    o_ref[...] = o.reshape(block_b, num_heads, seq, d_out).astype(o_ref.dtype)


def multihead_attention_wrapper(x, wq, wk, wv, *, block_b=None, mxu_dtype=None):
    """x: (B, S, d_in); wq/wk/wv: (H, d_in, d_out). Returns (B, S, H*d_out).

    Equivalent to torch.cat([head(x) for head in heads], dim=-1) in eval mode.
    """
    B, S, d_in = x.shape
    H, _, d_out = wq.shape

    if block_b is None:
        # Largest divisor of B up to 8 -> amortize per-grid-step overhead.
        block_b = next(c for c in range(min(B, 8), 0, -1) if B % c == 0)
    assert B % block_b == 0, (B, block_b)

    # Fold the 1/sqrt(d_out) attention scale into the query weights (exact,
    # constant-folded at trace time).
    wq_scaled = wq * (1.0 / math.sqrt(d_out))

    grid = (B // block_b,)
    x_spec = pl.BlockSpec((block_b, S, d_in), lambda b: (b, 0, 0))
    w_spec = pl.BlockSpec((H, d_in, d_out), lambda b: (0, 0, 0))       # resident
    o_spec = pl.BlockSpec((block_b, H, S, d_out), lambda b: (b, 0, 0, 0))

    kernel = partial(_mha_kernel, num_heads=H, d_out=d_out, mxu_dtype=mxu_dtype)

    out = pl.pallas_call(
        kernel,
        out_shape=jax.ShapeDtypeStruct((B, H, S, d_out), x.dtype),
        grid_spec=pltpu.PrefetchScalarGridSpec(
            num_scalar_prefetch=0,
            grid=grid,
            in_specs=[x_spec, w_spec, w_spec, w_spec],
            out_specs=o_spec,
        ),
        compiler_params=pltpu.CompilerParams(
            dimension_semantics=("parallel",)),
    )(x, wq_scaled, wk, wv)

    # Head-concat (torch.cat(dim=-1)) layout fixup done wrapper-side so the
    # kernel never needs a second-minor transpose.
    return jnp.transpose(out, (0, 2, 1, 3)).reshape(B, S, H * d_out)


def _reference(x, wq, wk, wv):
    """Pure-JAX reference mirroring the PyTorch module (eval mode)."""
    B, S, d_in = x.shape
    H, _, d_out = wq.shape
    outs = []
    for h in range(H):
        q = x @ wq[h]
        k = x @ wk[h]
        v = x @ wv[h]
        scores = jnp.einsum("bqd,bkd->bqk", q, k) / math.sqrt(d_out)
        mask = jnp.triu(jnp.ones((S, S), dtype=bool), k=1)
        scores = jnp.where(mask[None], -1e30, scores)
        attn = jax.nn.softmax(scores, axis=-1)
        outs.append(jnp.einsum("bqk,bkd->bqd", attn, v))
    return jnp.concatenate(outs, axis=-1)


if __name__ == "__main__":
    # Module hyper-params (small, consistent with the forward pass)
    d_in = 32
    d_out = 16
    context_length = 8   # == seq length used
    dropout = 0.0        # eval-equivalent
    num_heads = 2
    qkv_bias = False     # heads have no bias terms

    batch, seq = 2, context_length

    key = jax.random.PRNGKey(0)
    kx, kq, kk, kv = jax.random.split(key, 4)

    # Deterministic parameter init (stand-in for nn.Linear weights, stored as
    # (d_in, d_out) so that y = x @ W, i.e. W == torch_linear.weight.T)
    scale = 1.0 / math.sqrt(d_in)
    x = jax.random.normal(kx, (batch, seq, d_in), dtype=jnp.float32)
    wq = jax.random.uniform(kq, (num_heads, d_in, d_out), jnp.float32, -scale, scale)
    wk = jax.random.uniform(kk, (num_heads, d_in, d_out), jnp.float32, -scale, scale)
    wv = jax.random.uniform(kv, (num_heads, d_in, d_out), jnp.float32, -scale, scale)

    out = multihead_attention_wrapper(x, wq, wk, wv)
    out = jax.block_until_ready(out)

    ref = _reference(x, wq, wk, wv)
    assert out.shape == (batch, seq, num_heads * d_out), out.shape
    assert jnp.allclose(out, ref, atol=1e-4, rtol=1e-4), float(
        jnp.max(jnp.abs(out - ref)))

    print("KERNEL_OK")
</pallas_src>

<mosaic_0001>
module attributes {stable_mosaic.version = 11 : i64} {
  func.func @_mha_kernel(%arg0: i32, %arg1: memref<2x8x32xf32, #tpu.memory_space<vmem>>, %arg2: memref<2x32x16xf32, #tpu.memory_space<vmem>>, %arg3: memref<2x32x16xf32, #tpu.memory_space<vmem>>, %arg4: memref<2x32x16xf32, #tpu.memory_space<vmem>>, %arg5: memref<2x2x8x16xf32, #tpu.memory_space<vmem>>) attributes {dimension_semantics = [#tpu.dimension_semantics<parallel>], iteration_bounds = array<i64: 1>, scalar_prefetch = 0 : i64, scratch_operands = 0 : i64, tpu.core_type = #tpu.core_type<tc>, window_params = [{transform_indices = @transform_0, window_bounds = array<i64: 2, 8, 32>}, {pipeline_mode = #tpu.pipeline_mode<synchronous>, transform_indices = @transform_1, window_bounds = array<i64: 2, 32, 16>}, {pipeline_mode = #tpu.pipeline_mode<synchronous>, transform_indices = @transform_2, window_bounds = array<i64: 2, 32, 16>}, {pipeline_mode = #tpu.pipeline_mode<synchronous>, transform_indices = @transform_3, window_bounds = array<i64: 2, 32, 16>}, {transform_indices = @transform_4, window_bounds = array<i64: 2, 2, 8, 16>}]} {
    %c0 = arith.constant 0 : index
    %c0_0 = arith.constant 0 : index
    %c0_1 = arith.constant 0 : index
    %0 = vector.load %arg1[%c0, %c0_0, %c0_1] : memref<2x8x32xf32, #tpu.memory_space<vmem>>, vector<2x8x32xf32>
    %c0_2 = arith.constant 0 : index
    %c0_3 = arith.constant 0 : index
    %c0_4 = arith.constant 0 : index
    %1 = vector.load %arg2[%c0_2, %c0_3, %c0_4] : memref<2x32x16xf32, #tpu.memory_space<vmem>>, vector<2x32x16xf32>
    %c0_5 = arith.constant 0 : index
    %c0_6 = arith.constant 0 : index
    %c0_7 = arith.constant 0 : index
    %2 = vector.load %arg3[%c0_5, %c0_6, %c0_7] : memref<2x32x16xf32, #tpu.memory_space<vmem>>, vector<2x32x16xf32>
    %c0_8 = arith.constant 0 : index
    %c0_9 = arith.constant 0 : index
    %c0_10 = arith.constant 0 : index
    %3 = vector.load %arg4[%c0_8, %c0_9, %c0_10] : memref<2x32x16xf32, #tpu.memory_space<vmem>>, vector<2x32x16xf32>
    %4 = vector.shape_cast %0 : vector<2x8x32xf32> to vector<2x1x8x32xf32>
    %5 = vector.shape_cast %4 : vector<2x1x8x32xf32> to vector<2x1x8x32xf32>
    %6 = vector.broadcast %5 : vector<2x1x8x32xf32> to vector<2x2x8x32xf32>
    %7 = vector.shape_cast %6 : vector<2x2x8x32xf32> to vector<4x8x32xf32>
    %8 = vector.shape_cast %1 : vector<2x32x16xf32> to vector<1x2x32x16xf32>
    %9 = vector.shape_cast %8 : vector<1x2x32x16xf32> to vector<1x2x32x16xf32>
    %10 = vector.broadcast %9 : vector<1x2x32x16xf32> to vector<2x2x32x16xf32>
    %11 = vector.shape_cast %10 : vector<2x2x32x16xf32> to vector<4x32x16xf32>
    %12 = vector.shape_cast %2 : vector<2x32x16xf32> to vector<1x2x32x16xf32>
    %13 = vector.shape_cast %12 : vector<1x2x32x16xf32> to vector<1x2x32x16xf32>
    %14 = vector.broadcast %13 : vector<1x2x32x16xf32> to vector<2x2x32x16xf32>
    %15 = vector.shape_cast %14 : vector<2x2x32x16xf32> to vector<4x32x16xf32>
    %16 = vector.shape_cast %3 : vector<2x32x16xf32> to vector<1x2x32x16xf32>
    %17 = vector.shape_cast %16 : vector<1x2x32x16xf32> to vector<1x2x32x16xf32>
    %18 = vector.broadcast %17 : vector<1x2x32x16xf32> to vector<2x2x32x16xf32>
    %19 = vector.shape_cast %18 : vector<2x2x32x16xf32> to vector<4x32x16xf32>
    "tpu.trace_start"() <{level = 10 : i32, message = "bsd,bde->bse"}> : () -> ()
    %cst = arith.constant dense<0.000000e+00> : vector<4x8x16xf32>
    %20 = tpu.matmul %7, %11, %cst {dimension_numbers = #tpu.dot_dimension_numbers<[2], [1], [1], [2], [0, 0, 0, 1, 1, 2], [0], [0]>} : vector<4x8x32xf32>, vector<4x32x16xf32>, vector<4x8x16xf32> -> vector<4x8x16xf32>
    %cst_11 = arith.constant dense<0.000000e+00> : vector<4x8x16xf32>
    %21 = tpu.matmul %7, %15, %cst_11 {dimension_numbers = #tpu.dot_dimension_numbers<[2], [1], [1], [2], [0, 0, 0, 1, 1, 2], [0], [0]>} : vector<4x8x32xf32>, vector<4x32x16xf32>, vector<4x8x16xf32> -> vector<4x8x16xf32>
    %cst_12 = arith.constant dense<0.000000e+00> : vector<4x8x16xf32>
    %22 = tpu.matmul %7, %19, %cst_12 {dimension_numbers = #tpu.dot_dimension_numbers<[2], [1], [1], [2], [0, 0, 0, 1, 1, 2], [0], [0]>} : vector<4x8x32xf32>, vector<4x32x16xf32>, vector<4x8x16xf32> -> vector<4x8x16xf32>
    "tpu.trace_stop"() : () -> ()
    "tpu.trace_start"() <{level = 10 : i32, message = "bqd,bkd->bqk"}> : () -> ()
    %cst_13 = arith.constant dense<0.000000e+00> : vector<4x8x8xf32>
    %23 = tpu.matmul %20, %21, %cst_13 {dimension_numbers = #tpu.dot_dimension_numbers<[2], [2], [1], [1], [0, 0, 0, 1, 1, 1], [0], [0]>} : vector<4x8x16xf32>, vector<4x8x16xf32>, vector<4x8x8xf32> -> vector<4x8x8xf32>
    "tpu.trace_stop"() : () -> ()
    %24 = tpu.iota {dimensions = array<i32: 0>} : vector<8x8xi32>
    %25 = tpu.iota {dimensions = array<i32: 1>} : vector<8x8xi32>
    %26 = arith.cmpi sle, %25, %24 : vector<8x8xi32>
    %27 = vector.shape_cast %26 : vector<8x8xi1> to vector<1x8x8xi1>
    %cst_14 = arith.constant -1.000000e+30 : f32
    %28 = vector.shape_cast %27 : vector<1x8x8xi1> to vector<1x8x8xi1>
    %29 = vector.broadcast %28 : vector<1x8x8xi1> to vector<4x8x8xi1>
    %30 = vector.broadcast %cst_14 : f32 to vector<4x8x8xf32>
    %31 = arith.select %29, %23, %30 : vector<4x8x8xi1>, vector<4x8x8xf32>
    %cst_15 = arith.constant dense<0xFF800000> : vector<4x8xf32>
    %32 = vector.multi_reduction <maximumf>, %31, %cst_15 [2] : vector<4x8x8xf32> to vector<4x8xf32>
    %33 = vector.shape_cast %32 : vector<4x8xf32> to vector<4x8x1xf32>
    %34 = vector.broadcast %33 : vector<4x8x1xf32> to vector<4x8x8xf32>
    %35 = arith.subf %31, %34 : vector<4x8x8xf32>
    %36 = math.exp %35 : vector<4x8x8xf32>
    %cst_16 = arith.constant dense<0.000000e+00> : vector<4x8xf32>
    %37 = vector.multi_reduction <add>, %36, %cst_16 [2] : vector<4x8x8xf32> to vector<4x8xf32>
    %38 = vector.shape_cast %37 : vector<4x8xf32> to vector<4x8x1xf32>
    "tpu.trace_start"() <{level = 10 : i32, message = "bqk,bkd->bqd"}> : () -> ()
    %cst_17 = arith.constant dense<0.000000e+00> : vector<4x8x16xf32>
    %39 = tpu.matmul %36, %22, %cst_17 {dimension_numbers = #tpu.dot_dimension_numbers<[2], [1], [1], [2], [0, 0, 0, 1, 1, 2], [0], [0]>} : vector<4x8x8xf32>, vector<4x8x16xf32>, vector<4x8x16xf32> -> vector<4x8x16xf32>
    "tpu.trace_stop"() : () -> ()
    %40 = tpu.reciprocal %38 : vector<4x8x1xf32> -> vector<4x8x1xf32>
    %41 = vector.broadcast %40 : vector<4x8x1xf32> to vector<4x8x16xf32>
    %42 = arith.mulf %39, %41 : vector<4x8x16xf32>
    %43 = vector.shape_cast %42 : vector<4x8x16xf32> to vector<2x2x8x16xf32>
    %c0_18 = arith.constant 0 : index
    %c0_19 = arith.constant 0 : index
    %c0_20 = arith.constant 0 : index
    %c0_21 = arith.constant 0 : index
    %44 = vector.load %arg5[%c0_18, %c0_19, %c0_20, %c0_21] : memref<2x2x8x16xf32, #tpu.memory_space<vmem>>, vector<2x2x8x16xf32>
    tpu.vector_store %arg5[%c0_18, %c0_19, %c0_20, %c0_21], %43 {strides = array<i32>} : memref<2x2x8x16xf32, #tpu.memory_space<vmem>>, vector<2x2x8x16xf32>,
    return
  }
  func.func @transform_0(%arg0: i32) -> (i32, i32, i32) {
    %c0_i32 = arith.constant 0 : i32
    %c0_i32_0 = arith.constant 0 : i32
    %c0_i32_1 = arith.constant 0 : i32
    return %arg0, %c0_i32, %c0_i32_0 : i32, i32, i32
  }
  func.func @transform_1(%arg0: i32) -> (i32, i32, i32) {
    %c0_i32 = arith.constant 0 : i32
    %c0_i32_0 = arith.constant 0 : i32
    %c0_i32_1 = arith.constant 0 : i32
    %c0_i32_2 = arith.constant 0 : i32
    return %c0_i32, %c0_i32_0, %c0_i32_1 : i32, i32, i32
  }
  func.func @transform_2(%arg0: i32) -> (i32, i32, i32) {
    %c0_i32 = arith.constant 0 : i32
    %c0_i32_0 = arith.constant 0 : i32
    %c0_i32_1 = arith.constant 0 : i32
    %c0_i32_2 = arith.constant 0 : i32
    return %c0_i32, %c0_i32_0, %c0_i32_1 : i32, i32, i32
  }
  func.func @transform_3(%arg0: i32) -> (i32, i32, i32) {
    %c0_i32 = arith.constant 0 : i32
    %c0_i32_0 = arith.constant 0 : i32
    %c0_i32_1 = arith.constant 0 : i32
    %c0_i32_2 = arith.constant 0 : i32
    return %c0_i32, %c0_i32_0, %c0_i32_1 : i32, i32, i32
  }
  func.func @transform_4(%arg0: i32) -> (i32, i32, i32, i32) {
    %c0_i32 = arith.constant 0 : i32
    %c0_i32_0 = arith.constant 0 : i32
    %c0_i32_1 = arith.constant 0 : i32
    %c0_i32_2 = arith.constant 0 : i32
    return %arg0, %c0_i32, %c0_i32_0, %c0_i32_1 : i32, i32, i32, i32
  }
}

</mosaic_0001>

<bundles_post_ra>
// kernel: tpu_custom_call.1
= control target key start
LH: loop header
LB: loop body
LE: loop exit
PB: predicated region body
PF: predicated region fallthrough
CT: control target
= control target key end

     0   :  { %v1879_v2 = vmov 0.0   ;;  %vm44_vm0 = vcmask 261120   ;;  %s2142_s0 = inlined_call_operand.vmem [shape: f32[2,8,32], index: 0, kind: input, shape index: {}]   ;;  %s2143_s1 = inlined_call_operand.vmem [shape: f32[2,32,16], index: 1, kind: input, shape index: {}]   ;;  %s2144_s2 = inlined_call_operand.vmem [shape: f32[2,32,16], index: 2, kind: input, shape index: {}]   ;;  %s2145_s3 = inlined_call_operand.vmem [shape: f32[2,32,16], index: 3, kind: input, shape index: {}]   ;;  %s2146_s4 = inlined_call_operand.hbm [shape: f32[2,2,8,16], index: 4, kind: output, shape index: {}]  }
   0x1   :  { %v23_v0 = vld [vmem:[%s2143_s1 + $0x18] sm:$0xff]  ;;  %1664 = vmatprep.subr.mxu0 %v1879_v2  ;;  %1675 = vmatprep.subr.mxu1 %v1879_v2  ;;  %v22_v3 = vld [vmem:[%s2143_s1 + $0x10] sm:$0xff]  ;;  %v21_v5 = vld [vmem:[%s2143_s1 + $0x8] sm:$0xff] }
   0x2   :  { %v27_v1 = vld [vmem:[%s2143_s1 + $0x38] sm:$0xff]  ;;  %v26_v4 = vld [vmem:[%s2143_s1 + $0x30] sm:$0xff]  ;;  %1665 = vmatpush3.msra.mxu0 %v23_v0  ;;  %v25_v6 = vld [vmem:[%s2143_s1 + $0x28] sm:$0xff] }
   0x3   :  { %1676 = vmatpush3.msra.mxu1 %v27_v1  ;;  %1666 = vmatprep.subr.mxu0 %v1879_v2  ;;  %v20_v7 = vld [vmem:[%s2143_s1] sm:$0xff] }
   0x4   :  { %1677 = vmatprep.subr.mxu1 %v1879_v2  ;;  %1667 = vmatpush3.msra.mxu0 %v22_v3  ;;  %v24_v8 = vld [vmem:[%s2143_s1 + $0x20] sm:$0xff] }
   0x5   :  { %1678 = vmatpush3.msra.mxu1 %v26_v4  ;;  %1668 = vmatprep.subr.mxu0 %v1879_v2  ;;  %v1942_v9 = vld [vmem:[%s2142_s0] sm:$0xff] }
   0x6   :  { %1679 = vmatprep.subr.mxu1 %v1879_v2  ;;  %1669 = vmatpush3.msra.mxu0 %v21_v5 }
   0x7   :  { %1680 = vmatpush3.msra.mxu1 %v25_v6 }
   0x8   :  { %9 = vsyncpa [#allocation3], 0  ;;  %1670 = vmatprep.subr.mxu0 %v1879_v2  ;;  %1681 = vmatprep.subr.mxu1 %v1879_v2  ;;  %vm1880_vm1 = vmmov 0   ;;  %v1963_v10 = vld [vmem:[%s2142_s0 + $0x8] sm:$0xff]  ;;  %v31_v11 = vld [vmem:[%s2144_s2 + $0x18] sm:$0xff]  ;;  %vm891_vm2 = vcmask 130048   ;;  %v1196_v51 = vlaneseq }
   0x9   :  { %1671 = vmatpush3.msra.mxu0 %v20_v7  ;;  %1672 = vmatprep.mubr.msk.f32.mxu0 %vm1880_vm1, %v1879_v2  ;;  %v35_v12 = vld [vmem:[%s2144_s2 + $0x38] sm:$0xff]  ;;  %v30_v13 = vld [vmem:[%s2144_s2 + $0x10] sm:$0xff]  ;;  %v29_v15 = vld [vmem:[%s2144_s2 + $0x8] sm:$0xff]  ;;  %vm1207_vm4 = vcmask 64512  }
   0xa   :  { %1682 = vmatpush3.msra.mxu1 %v24_v8  ;;  %1673 = vmatmul.mubr.msk.f32.vlgmr.msra.gmra.mxu0 %vm44_vm0, %v1942_v9  ;;  %v34_v14 = vld [vmem:[%s2144_s2 + $0x30] sm:$0xff]  ;;  %v33_v16 = vld [vmem:[%s2144_s2 + $0x28] sm:$0xff]  ;;  %v28_v17 = vld [vmem:[%s2144_s2] sm:$0xff]  ;;  %v1197_v52 = vshrl.u32 %v1196_v51, 7  ;;  %v1199_v53 = vand.u32 127, %v1196_v51 }
   0xb   :  { %1683 = vmatprep.mubr.msk.f32.mxu1 %vm1880_vm1, %v1879_v2  ;;  %1686 = vmatprep.subr.mxu0 %v1879_v2  ;;  %v32_v18 = vld [vmem:[%s2144_s2 + $0x20] sm:$0xff]  ;;  %v39_v19 = vld [vmem:[%s2145_s3 + $0x18] sm:$0xff]  ;;  %v38_v21 = vld [vmem:[%s2145_s3 + $0x10] sm:$0xff] }
   0xc   :  { %1697 = vmatprep.subr.mxu1 %v1879_v2  ;;  %1684 = vmatmul.mubr.msk.f32.vlgmr.msra.gmra.mxu1 %vm44_vm0, %v1942_v9  ;;  %v43_v20 = vld [vmem:[%s2145_s3 + $0x38] sm:$0xff]  ;;  %v42_v22 = vld [vmem:[%s2145_s3 + $0x30] sm:$0xff]  ;;  %v37_v23 = vld [vmem:[%s2145_s3 + $0x8] sm:$0xff]  ;;  %vm1200_vm3 = vcmp.le.s32.totalorder %v1199_v53, %v1197_v52 }
   0xd   :  { %1687 = vmatpush3.msra.mxu0 %v23_v0  ;;  %1698 = vmatpush3.msra.mxu1 %v27_v1  ;;  %v41_v24 = vld [vmem:[%s2145_s3 + $0x28] sm:$0xff]  ;;  %v36_v25 = vld [vmem:[%s2145_s3] sm:$0xff] }
   0xe   :  { %1688 = vmatprep.subr.mxu0 %v1879_v2  ;;  %1699 = vmatprep.subr.mxu1 %v1879_v2  ;;  %v40_v26 = vld [vmem:[%s2145_s3 + $0x20] sm:$0xff]  ;;  %s1881_s3 = smov [#allocation2]  }
   0xf   :  { %1689 = vmatpush3.msra.mxu0 %v22_v3  ;;  %1700 = vmatpush3.msra.mxu1 %v26_v4  ;;  %s1553_s11 = sshll.u32 %s1881_s3, 4  ;;  %s1554_s11 = int_to_ptr.vmem [resolvable:$true] %s1553_s11 }
  0x10   :  { %1690 = vmatprep.subr.mxu0 %v1879_v2  ;;  %1701 = vmatprep.subr.mxu1 %v1879_v2  ;;  %s1857_s0 = scalar_lea.vmem %s1554_s11, 512  ;;  %p1862_p1 = scmp.lt.s32.totalorder %s1554_s11, %s1554_s11 }
  0x11   :  { %1691 = vmatpush3.msra.mxu0 %v21_v5  ;;  %1702 = vmatpush3.msra.mxu1 %v25_v6  ;;  %p1858_p0 = scmp.ne.s32.totalorder %s1554_s11, %s1857_s0  ;;  %p1863_p2 = scmp.lt.s32.totalorder %s1857_s0, %s1857_s0 }
  0x12   :  { %1692 = vmatprep.subr.mxu0 %v1879_v2  ;;  %1703 = vmatprep.subr.mxu1 %v1879_v2 }
  0x13   :  { %1693 = vmatpush3.msra.mxu0 %v20_v7  ;;  %1694 = vmatprep.mubr.msk.f32.mxu0 %vm1880_vm1, %v1879_v2  ;;  %p1864_p3 = por %p1863_p2, %p1862_p1 }
  0x14   :  { %1704 = vmatpush3.msra.mxu1 %v24_v8  ;;  %1695 = vmatmul.mubr.msk.f32.vlgmr.msra.gmra.mxu0 %vm44_vm0, %v1963_v10 }
  0x15   :  { %1705 = vmatprep.mubr.msk.f32.mxu1 %vm1880_vm1, %v1879_v2  ;;  %1708 = vmatprep.subr.mxu0 %v1879_v2  ;;  %p1865_p4 = pnand %p1864_p3, %p1858_p0 }
  0x16   :  { %1719 = vmatprep.subr.mxu1 %v1879_v2  ;;  %1706 = vmatmul.mubr.msk.f32.vlgmr.msra.gmra.mxu1 %vm44_vm0, %v1963_v10 }
  0x17   :  { %1709 = vmatpush3.msra.mxu0 %v31_v11  ;;  %1720 = vmatpush3.msra.mxu1 %v35_v12 }
  0x18   :  { %1710 = vmatprep.subr.mxu0 %v1879_v2  ;;  %1721 = vmatprep.subr.mxu1 %v1879_v2 }
  0x19   :  { %1711 = vmatpush3.msra.mxu0 %v30_v13  ;;  %1722 = vmatpush3.msra.mxu1 %v34_v14 }
  0x1a   :  { %1712 = vmatprep.subr.mxu0 %v1879_v2  ;;  %1723 = vmatprep.subr.mxu1 %v1879_v2 }
  0x1b   :  { %1713 = vmatpush3.msra.mxu0 %v29_v15  ;;  %1724 = vmatpush3.msra.mxu1 %v33_v16 }
  0x1c   :  { %1714 = vmatprep.subr.mxu0 %v1879_v2  ;;  %1725 = vmatprep.subr.mxu1 %v1879_v2 }
  0x1d   :  { %1715 = vmatpush3.msra.mxu0 %v28_v17  ;;  %1716 = vmatprep.mubr.msk.f32.mxu0 %vm1880_vm1, %v1879_v2 }
  0x1e   :  { %1726 = vmatpush3.msra.mxu1 %v32_v18  ;;  %1727 = vmatprep.mubr.msk.f32.mxu1 %vm1880_vm1, %v1879_v2 }
  0x1f   :  { %1717 = vmatmul.mubr.msk.f32.vlgmr.msra.gmra.mxu0 %vm44_vm0, %v1942_v9  ;;  %1728 = vmatmul.mubr.msk.f32.vlgmr.msra.gmra.mxu1 %vm44_vm0, %v1942_v9 }
  0x20   :  { %1730 = vmatprep.subr.mxu0 %v1879_v2  ;;  %1741 = vmatprep.subr.mxu1 %v1879_v2 }
  0x21   :  { %1731 = vmatpush3.msra.mxu0 %v31_v11  ;;  %1742 = vmatpush3.msra.mxu1 %v35_v12 }
  0x22   :  { %1732 = vmatprep.subr.mxu0 %v1879_v2  ;;  %1743 = vmatprep.subr.mxu1 %v1879_v2 }
  0x23   :  { %1733 = vmatpush3.msra.mxu0 %v30_v13  ;;  %1744 = vmatpush3.msra.mxu1 %v34_v14 }
  0x24   :  { %1734 = vmatprep.subr.mxu0 %v1879_v2  ;;  %1745 = vmatprep.subr.mxu1 %v1879_v2 }
  0x25   :  { %1735 = vmatpush3.msra.mxu0 %v29_v15  ;;  %1746 = vmatpush3.msra.mxu1 %v33_v16 }
  0x26   :  { %1736 = vmatprep.subr.mxu0 %v1879_v2  ;;  %1747 = vmatprep.subr.mxu1 %v1879_v2 }
  0x27   :  { %1737 = vmatpush3.msra.mxu0 %v28_v17  ;;  %1738 = vmatprep.mubr.msk.f32.mxu0 %vm1880_vm1, %v1879_v2 }
  0x28   :  { %1748 = vmatpush3.msra.mxu1 %v32_v18  ;;  %1749 = vmatprep.mubr.msk.f32.mxu1 %vm1880_vm1, %v1879_v2 }
  0x29   :  { %1739 = vmatmul.mubr.msk.f32.vlgmr.msra.gmra.mxu0 %vm44_vm0, %v1963_v10  ;;  %1750 = vmatmul.mubr.msk.f32.vlgmr.msra.gmra.mxu1 %vm44_vm0, %v1963_v10 }
  0x2a   :  { %1752 = vmatprep.subr.mxu0 %v1879_v2  ;;  %1763 = vmatprep.subr.mxu1 %v1879_v2 }
  0x2b   :  { %1760 = vmatprep.mubr.msk.f32.mxu0 %vm1880_vm1, %v1879_v2  ;;  %1771 = vmatprep.mubr.msk.f32.mxu1 %vm1880_vm1, %v1879_v2 }
  0x2c   :  { %1753 = vmatpush3.msra.mxu0 %v39_v19  ;;  %1764 = vmatpush3.msra.mxu1 %v43_v20 }
  0x2d   :  { %1754 = vmatprep.subr.mxu0 %v1879_v2  ;;  %1765 = vmatprep.subr.mxu1 %v1879_v2 }
  0x2e   :  { %1755 = vmatpush3.msra.mxu0 %v38_v21  ;;  %1766 = vmatpush3.msra.mxu1 %v42_v22 }
  0x2f   :  { %1756 = vmatprep.subr.mxu0 %v1879_v2  ;;  %1767 = vmatprep.subr.mxu1 %v1879_v2 }
  0x30   :  { %1757 = vmatpush3.msra.mxu0 %v37_v23  ;;  %1768 = vmatpush3.msra.mxu1 %v41_v24 }
  0x31   :  { %1758 = vmatprep.subr.mxu0 %v1879_v2  ;;  %1769 = vmatprep.subr.mxu1 %v1879_v2 }
  0x32   :  { %1759 = vmatpush3.msra.mxu0 %v36_v25  ;;  %1770 = vmatpush3.msra.mxu1 %v40_v26 }
  0x33   :  { %1774 = vmatprep.subr.mxu0 %v1879_v2  ;;  %1785 = vmatprep.subr.mxu1 %v1879_v2 }
  0x34   :  { %1761 = vmatmul.mubr.msk.f32.vlgmr.msra.gmra.mxu0 %vm44_vm0, %v1942_v9  ;;  %1772 = vmatmul.mubr.msk.f32.vlgmr.msra.gmra.mxu1 %vm44_vm0, %v1942_v9 }
  0x35   :  { %1775 = vmatpush3.msra.mxu0 %v39_v19  ;;  %1786 = vmatpush3.msra.mxu1 %v43_v20 }
  0x36   :  { %1776 = vmatprep.subr.mxu0 %v1879_v2  ;;  %1787 = vmatprep.subr.mxu1 %v1879_v2 }
  0x37   :  { %1777 = vmatpush3.msra.mxu0 %v38_v21  ;;  %1788 = vmatpush3.msra.mxu1 %v42_v22 }
  0x38   :  { %1778 = vmatprep.subr.mxu0 %v1879_v2  ;;  %1789 = vmatprep.subr.mxu1 %v1879_v2 }
  0x39   :  { %1779 = vmatpush3.msra.mxu0 %v37_v23  ;;  %1790 = vmatpush3.msra.mxu1 %v41_v24 }
  0x3a   :  { %1780 = vmatprep.subr.mxu0 %v1879_v2  ;;  %1791 = vmatprep.subr.mxu1 %v1879_v2 }
  0x3b   :  { %1781 = vmatpush3.msra.mxu0 %v36_v25  ;;  %1782 = vmatprep.mubr.msk.f32.mxu0 %vm1880_vm1, %v1879_v2 }
  0x3c   :  { %1792 = vmatpush3.msra.mxu1 %v40_v26  ;;  %1793 = vmatprep.mubr.msk.f32.mxu1 %vm1880_vm1, %v1879_v2 }
  0x3d   :  { %1783 = vmatmul.mubr.msk.f32.vlgmr.msra.gmra.mxu0 %vm44_vm0, %v1963_v10  ;;  %1794 = vmatmul.mubr.msk.f32.vlgmr.msra.gmra.mxu1 %vm44_vm0, %v1963_v10 }
  0x3e   :  { %1796 = vmatprep.subr.mxu0 %v1879_v2  ;;  %1801 = vmatprep.subr.mxu1 %v1879_v2 }
  0x3f   :  { %1798 = vmatprep.mubr.msk.f32.mxu0 %vm1880_vm1, %v1879_v2  ;;  %1803 = vmatprep.mubr.msk.f32.mxu1 %vm1880_vm1, %v1879_v2 }
  0xca   :  { %v114_v27 = vpop.f32.mrf.mxu0 }
  0xcc   :  { %v1674_v28 = vpop.f32.mrf.mxu0  ;;  %v184_v29 = vpop.f32.mrf.mxu1 }
  0xce   :  { %v1685_v30 = vpop.f32.mrf.mxu1 }
  0xd4   :  { %v257_v31 = vpop.f32.mrf.mxu0 }
  0xd6   :  { %v1696_v32 = vpop.f32.mrf.mxu0  ;;  %v327_v33 = vpop.f32.mrf.mxu1 }
  0xd8   :  { %v1707_v34 = vpop.f32.mrf.mxu1 }
  0xdf   :  { %v397_v35 = vpop.f32.mrf.mxu0  ;;  %v467_v36 = vpop.f32.mrf.mxu1 }
  0xe0   :  { %1797 = vmatpush3.xpose.msk.msra.mxu0 %vm891_vm2, %v397_v35  ;;  %1802 = vmatpush3.xpose.msk.msra.mxu1 %vm891_vm2, %v467_v36 }
  0xe1   :  { %v1718_v37 = vpop.f32.mrf.mxu0  ;;  %v1729_v38 = vpop.f32.mrf.mxu1  ;;  %1806 = vmatprep.subr.mxu0 %v1879_v2  ;;  %1811 = vmatprep.subr.mxu1 %v1879_v2 }
  0xe3   :  { %1799 = vmatmul.mubr.msk.f32.vlgmr.msra.gmra.mxu0 %vm891_vm2, %v114_v27  ;;  %1804 = vmatmul.mubr.msk.f32.vlgmr.msra.gmra.mxu1 %vm891_vm2, %v184_v29 }
  0xe4   :  { %1808 = vmatprep.mubr.msk.f32.mxu0 %vm1880_vm1, %v1879_v2  ;;  %1813 = vmatprep.mubr.msk.f32.mxu1 %vm1880_vm1, %v1879_v2 }
  0xe9   :  { %v537_v39 = vpop.f32.mrf.mxu0  ;;  %v607_v40 = vpop.f32.mrf.mxu1 }
  0xea   :  { %1807 = vmatpush3.xpose.msk.msra.mxu0 %vm891_vm2, %v537_v39  ;;  %1812 = vmatpush3.xpose.msk.msra.mxu1 %vm891_vm2, %v607_v40 }
  0xeb   :  { %v1740_v41 = vpop.f32.mrf.mxu0  ;;  %v1751_v42 = vpop.f32.mrf.mxu1  ;;  %1816 = vmatprep.subr.mxu0 %v1879_v2  ;;  %1821 = vmatprep.subr.mxu1 %v1879_v2 }
  0xed   :  { %1809 = vmatmul.mubr.msk.f32.vlgmr.msra.gmra.mxu0 %vm891_vm2, %v257_v31  ;;  %1814 = vmatmul.mubr.msk.f32.vlgmr.msra.gmra.mxu1 %vm891_vm2, %v327_v33 }
  0xee   :  { %1818 = vmatprep.mubr.msk.f32.mxu0 %vm1880_vm1, %v1879_v2  ;;  %1823 = vmatprep.mubr.msk.f32.mxu1 %vm1880_vm1, %v1879_v2 }
  0xf4   :  { %v677_v43 = vpop.f32.mrf.mxu0  ;;  %v747_v44 = vpop.f32.mrf.mxu1 }
  0xf5   :  { %1817 = vmatpush3.msra.mxu0 %v677_v43  ;;  %1822 = vmatpush3.msra.mxu1 %v747_v44 }
  0xf6   :  { %v1762_v45 = vpop.f32.mrf.mxu0  ;;  %v1773_v46 = vpop.f32.mrf.mxu1  ;;  %1826 = vmatprep.subr.mxu0 %v1879_v2  ;;  %1831 = vmatprep.subr.mxu1 %v1879_v2 }
  0xfd   :  { %v817_v47 = vpop.f32.mrf.mxu0  ;;  %v887_v48 = vpop.f32.mrf.mxu1 }
  0xff   :  { %v1784_v49 = vpop.f32.mrf.mxu0  ;;  %v1795_v50 = vpop.f32.mrf.mxu1 }
 0x1a3   :  { %v964_v54 = vpop.f32.mrf.mxu0  ;;  %v1040_v55 = vpop.f32.mrf.mxu1 }
 0x1a4   :  { %v1203_v56 = vsel %vm1200_vm3, %v964_v54, -1e+30  ;;  %v1204_v60 = vsel %vm1200_vm3, %v1040_v55, -1e+30 }
 0x1a5   :  { %v1800_v57 = vpop.f32.mrf.mxu0  ;;  %v1805_v58 = vpop.f32.mrf.mxu1  ;;  %v1208_v59 = vsel %vm1207_vm4, %v1203_v56, -inf  ;;  %v1211_v61 = vsel %vm1207_vm4, %v1204_v60, -inf }
 0x1a6   :  { %1209 = vmax.xlane.f32.xlu0 %v1208_v59 }
 0x1aa   :  { %1212 = vmax.xlane.f32.xlu0 %v1211_v61 }
 0x1ad   :  { %v1116_v62 = vpop.f32.mrf.mxu0  ;;  %v1192_v63 = vpop.f32.mrf.mxu1 }
 0x1ae   :  { %v1205_v0 = vsel %vm1200_vm3, %v1116_v62, -1e+30  ;;  %v1206_v5 = vsel %vm1200_vm3, %v1192_v63, -1e+30 }
 0x1af   :  { %v1810_v1 = vpop.f32.mrf.mxu0  ;;  %v1815_v3 = vpop.f32.mrf.mxu1  ;;  %v1214_v4 = vsel %vm1207_vm4, %v1205_v0, -inf  ;;  %v1217_v6 = vsel %vm1207_vm4, %v1206_v5, -inf }
 0x1b0   :  { %1215 = vmax.xlane.f32.xlu1 %v1214_v4 }
 0x1b4   :  { %1218 = vmax.xlane.f32.xlu1 %v1217_v6 }
 0x22f   :  { %v1210_v7 = vpop.xlane.xlu0 %1209 }
 0x230   :  { %v1220_v8 = vsub.f32 %v1203_v56, %v1210_v7 }
 0x232   :  { %v1224_v9 = vmul.f32 1.442695, %v1220_v8 }
 0x233   :  { %v1213_v10 = vpop.xlane.xlu0 %1212 }
 0x234   :  { %1841 = vpow2.f32 %v1224_v9  ;;  %v1221_v11 = vsub.f32 %v1204_v60, %v1213_v10 }
 0x236   :  { %v1226_v12 = vmul.f32 1.442695, %v1221_v11 }
 0x238   :  { %1843 = vpow2.f32 %v1226_v12 }
 0x239   :  { %v1216_v13 = vpop.xlane.xlu1 %1215 }
 0x23a   :  { %v1222_v14 = vsub.f32 %v1205_v0, %v1216_v13 }
 0x23c   :  { %v1228_v15 = vmul.f32 1.442695, %v1222_v14 }
 0x23d   :  { %v1219_v16 = vpop.xlane.xlu1 %1218 }
 0x23e   :  { %1845 = vpow2.f32 %v1228_v15  ;;  %v1223_v17 = vsub.f32 %v1206_v5, %v1219_v16 }
 0x240   :  { %v1230_v18 = vmul.f32 1.442695, %v1223_v17 }
 0x241   :  { %v1842_v19 = vpop.eup %1841 }
 0x242   :  { %1847 = vpow2.f32 %v1230_v18  ;;  %1819 = vmatmul.mubr.msk.f32.vlgmr.msra.gmra.mxu0 %vm1207_vm4, %v1842_v19  ;;  %v1232_v20 = vsel %vm1207_vm4, %v1842_v19, 0.0 }
 0x243   :  { %1827 = vmatpush3.msra.mxu0 %v817_v47  ;;  %1233 = vadd.xlane.f32.xlu0 %v1232_v20 }
 0x244   :  { %1828 = vmatprep.mubr.msk.f32.mxu0 %vm1880_vm1, %v1879_v2 }
 0x245   :  { %v1844_v21 = vpop.eup %1843 }
 0x246   :  { %1824 = vmatmul.mubr.msk.f32.vlgmr.msra.gmra.mxu1 %vm1207_vm4, %v1844_v21  ;;  %v1235_v22 = vsel %vm1207_vm4, %v1844_v21, 0.0 }
 0x247   :  { %1832 = vmatpush3.msra.mxu1 %v887_v48  ;;  %1236 = vadd.xlane.f32.xlu1 %v1235_v22 }
 0x248   :  { %1833 = vmatprep.mubr.msk.f32.mxu1 %vm1880_vm1, %v1879_v2 }
 0x24b   :  { %v1846_v23 = vpop.eup %1845 }
 0x24c   :  { %1829 = vmatmul.mubr.msk.f32.vlgmr.msra.gmra.mxu0 %vm1207_vm4, %v1846_v23  ;;  %v1238_v24 = vsel %vm1207_vm4, %v1846_v23, 0.0 }
 0x24d   :  { %1239 = vadd.xlane.f32.xlu0 %v1238_v24 }
 0x24f   :  { %v1848_v25 = vpop.eup %1847 }
 0x250   :  { %1834 = vmatmul.mubr.msk.f32.vlgmr.msra.gmra.mxu1 %vm1207_vm4, %v1848_v25  ;;  %v1241_v26 = vsel %vm1207_vm4, %v1848_v25, 0.0 }
 0x251   :  { %1242 = vadd.xlane.f32.xlu1 %v1241_v26 }
 0x2cc   :  { %v1234_v27 = vpop.xlane.xlu0 %1233 }
 0x2cd   :  { %1849 = vrcp.f32 %v1234_v27 }
 0x2d0   :  { %v1237_v28 = vpop.xlane.xlu1 %1236 }
 0x2d1   :  { %1851 = vrcp.f32 %v1237_v28 }
 0x2d6   :  { %v1240_v29 = vpop.xlane.xlu0 %1239 }
 0x2d7   :  { %1853 = vrcp.f32 %v1240_v29 }
 0x2da   :  { %v1243_v30 = vpop.xlane.xlu1 %1242  ;;  %v1850_v2 = vpop.eup %1849 }
 0x2db   :  { %1855 = vrcp.f32 %v1243_v30 }
 0x2de   :  { %v1852_v34 = vpop.eup %1851 }
 0x2e4   :  { %v1854_v38 = vpop.eup %1853 }
 0x2e8   :  { %v1856_v42 = vpop.eup %1855 }
 0x302   :  { %v1313_v31 = vpop.f32.mrf.mxu0 }
 0x303   :  { %v1540_v32 = vmul.f32 %v1850_v2, %v1313_v31 }
 0x304   :  { %v1820_v33 = vpop.f32.mrf.mxu0 }
 0x305   :  { %1544 = vst.msk [vmem:[#allocation2] sm:$0xff] %vm891_vm2, %v1540_v32 }
 0x306   :  { %v1386_v35 = vpop.f32.mrf.mxu1 }
 0x307   :  { %v1541_v36 = vmul.f32 %v1852_v34, %v1386_v35 }
 0x308   :  { %v1825_v37 = vpop.f32.mrf.mxu1 }
 0x309   :  { %1545 = vst.msk [vmem:[#allocation2 + $0x8] sm:$0xff] %vm891_vm2, %v1541_v36 }
 0x30c   :  { %v1459_v39 = vpop.f32.mrf.mxu0 }
 0x30d   :  { %v1542_v40 = vmul.f32 %v1854_v38, %v1459_v39 }
 0x30e   :  { %v1830_v41 = vpop.f32.mrf.mxu0 }
 0x30f   :  { %1546 = vst.msk [vmem:[#allocation2 + $0x10] sm:$0xff] %vm891_vm2, %v1542_v40 }
 0x310   :  { %v1532_v43 = vpop.f32.mrf.mxu1 }
 0x311   :  { %v1543_v44 = vmul.f32 %v1856_v42, %v1532_v43 }
 0x312   :  { %v1835_v45 = vpop.f32.mrf.mxu1 }
 0x313   :  { %1547 = vst.msk [vmem:[#allocation2 + $0x18] sm:$0xff] %vm891_vm2, %v1543_v44 }
 0x314   :  { %1868 = shalt.err (!%p1865_p4)
}
 0x315   :  { %s1882_s12 = smov 128   ;;  %s1883_s13 = smov 8  }
 0x316   :  { %1559 = dma.vmem_to_hbm [thread:$0]  %s1554_s11, 512, %s2146_s4, [#allocation3], %s1882_s12, %s1882_s12, %s1883_s13  }
 0x317   :  { %1877 = dma.done.wait [#allocation3], 512  }
 0x318   :  { %1878 = vsyncadd [#allocation3], 4294966784 }
 0x319   :  { %1563 = vsyncpa [#allocation3], 1 }

</bundles_post_ra>
